<compile_context>
chip_gen: v5e
topology: v5e:2x2
jax: 0.10.0
libtpu: 0.0.40
codegen_flags: <defaults>
</compile_context>

<pallas_src>
import math

import jax
import jax.numpy as jnp
from jax.experimental import pallas as pl
from jax.experimental.pallas import tpu as pltpu

_LANE = 128
_SUBLANE = 8
_PER_ARRAY_TILE_CAP = 4 * 1024 * 1024      # ~4 MiB per array per buffer
_FALLBACK_VMEM_BYTES = 64 * 1024 * 1024    # v7x per-TC VMEM (most restrictive)


def _vmem_capacity_bytes():
    """Physical VMEM capacity of the current TPU generation (with fallback)."""
    try:
        return int(pltpu.get_tpu_info().vmem_capacity_bytes)
    except Exception:
        return _FALLBACK_VMEM_BYTES


# ---------------------------------------------------------------------------
# 'add' policy:  out = sum(x)
# ---------------------------------------------------------------------------
def _make_add_kernel(num_inputs, acc_dtype):
    def add_kernel(*refs):
        out_ref = refs[num_inputs]
        acc = refs[0][...].astype(acc_dtype)  # no-op cast when dtypes match
        for i in range(1, num_inputs):
            acc = acc + refs[i][...].astype(acc_dtype)
        out_ref[...] = acc.astype(out_ref.dtype)

    return add_kernel


def merge_add(xs):
    xs = [jnp.asarray(x) for x in xs]
    shape = xs[0].shape
    if not all(x.shape == shape for x in xs):
        raise ValueError("'add' merge policy requires equal input shapes")

    num_inputs = len(xs)
    out_dtype = jnp.result_type(*xs)
    # Accumulate sub-32-bit floats in f32.  Note: more accurate than a native
    # bf16 chain sum, so it will not bit-match a bf16 torch reference.
    if jnp.issubdtype(out_dtype, jnp.floating) and jnp.dtype(out_dtype).itemsize < 4:
        acc_dtype = jnp.float32
    else:
        acc_dtype = out_dtype
    itemsize = jnp.dtype(out_dtype).itemsize

    total = int(math.prod(int(d) for d in shape)) if len(shape) else 1

    # Lane-dense 2-D presentation: (rows, lane), lane a multiple of 128.
    lane = None
    for cand in (1024, 512, 256, 128):
        if total % cand == 0:
            lane = cand
            break
    pad = 0
    if lane is None:
        # Pad the flattened view to a multiple of 8*128 so the tiled,
        # double-buffered path is used even for odd sizes; the padded tail is
        # sliced off after the kernel (negligible extra HBM traffic).
        lane = 1024
        padded_total = ((total + lane - 1) // lane) * lane
        pad = padded_total - total
        rows = padded_total // lane
        xs2d = [jnp.pad(x.reshape(-1), (0, pad)).reshape(rows, lane) for x in xs]
    else:
        rows = total // lane
        xs2d = [x.reshape(rows, lane) for x in xs]

    # Generation-aware tile sizing: budget ~half of VMEM for the
    # double-buffered working set (~32 MiB on v7x, ~64 MiB on v5e/v6e),
    # capped at ~4 MiB per array per buffer.
    vmem_cap = _vmem_capacity_bytes()
    target_total = vmem_cap // 2
    per_array = min(
        _PER_ARRAY_TILE_CAP,
        max(_SUBLANE * lane * itemsize, target_total // (2 * (num_inputs + 1))),
    )
    tile_rows = max(_SUBLANE, (per_array // (lane * itemsize) // _SUBLANE) * _SUBLANE)

    if tile_rows >= rows:
        if rows > _SUBLANE:
            # Split into >= 2 blocks so the "parallel" grid axis can shard
            # across both v7x TensorCores instead of collapsing to 1 step.
            half = (rows + 1) // 2
            tile_rows = ((half + _SUBLANE - 1) // _SUBLANE) * _SUBLANE
        else:
            tile_rows = rows  # full extent is always a legal block dim

    grid = (pl.cdiv(rows, tile_rows),)
    spec = pl.BlockSpec((tile_rows, lane), lambda i: (i, 0))

    # Explicit scoped-VMEM limit: double-buffered block footprint + headroom.
    footprint = 2 * (num_inputs + 1) * tile_rows * lane * itemsize
    vmem_limit = int(min(vmem_cap, footprint + (8 << 20)))

    flops = max(0, num_inputs - 1) * total
    bytes_accessed = sum(int(x.size) * x.dtype.itemsize for x in xs) + total * itemsize

    # NOTE: ragged last blocks (tile_rows not dividing rows) intentionally
    # rely on Pallas OOB-read padding + masked OOB writes (correct for add).
    out2d = pl.pallas_call(
        _make_add_kernel(num_inputs, acc_dtype),
        out_shape=jax.ShapeDtypeStruct((rows, lane), out_dtype),
        grid=grid,
        in_specs=[spec] * num_inputs,
        out_specs=spec,
        compiler_params=pltpu.CompilerParams(
            dimension_semantics=("parallel",),
            vmem_limit_bytes=vmem_limit,
        ),
        cost_estimate=pl.CostEstimate(
            flops=flops, transcendentals=0, bytes_accessed=bytes_accessed
        ),
    )(*xs2d)

    out = out2d.reshape(-1)
    if pad:
        out = out[:total]
    return out.reshape(shape)


# ---------------------------------------------------------------------------
# 'cat' policy:  out = concat(x, axis=1)   (channel concat, NCHW)
# ---------------------------------------------------------------------------
def _make_cat_dma_kernel(widths):
    num_inputs = len(widths)

    def cat_kernel(*refs):
        # refs = (x_0, ..., x_{K-1}, out, sem)   — all x/out are raw HBM refs.
        out_ref = refs[num_inputs]
        sem = refs[num_inputs + 1]
        copies = []
        off = 0
        for k, wd in enumerate(widths):
            cp = pltpu.make_async_copy(
                refs[k], out_ref.at[:, off:off + wd], sem.at[k]
            )
            cp.start()
            copies.append(cp)
            off += wd
        for cp in copies:
            cp.wait()

    return cat_kernel


def merge_cat(xs):
    xs = [jnp.asarray(x) for x in xs]
    num_inputs = len(xs)
    x0 = xs[0]
    if x0.ndim < 2:
        raise ValueError("'cat' merge policy requires inputs with ndim >= 2")
    n = int(x0.shape[0])
    trailing = tuple(int(d) for d in x0.shape[2:])
    for x in xs:
        if (
            x.ndim != x0.ndim
            or int(x.shape[0]) != n
            or tuple(int(d) for d in x.shape[2:]) != trailing
        ):
            raise ValueError("'cat' merge policy requires matching dims except dim 1")

    out_dtype = jnp.result_type(*xs)
    itemsize = jnp.dtype(out_dtype).itemsize
    inner = int(math.prod(trailing)) if trailing else 1
    channels = [int(x.shape[1]) for x in xs]
    widths = [c * inner for c in channels]
    d_total = sum(widths)

    bytes_accessed = (
        sum(int(x.size) * x.dtype.itemsize for x in xs) + n * d_total * itemsize
    )
    cost = pl.CostEstimate(flops=0, transcendentals=0, bytes_accessed=bytes_accessed)

    # Direct HBM->HBM DMA slab copies: no VMEM staging blocks, no in-core
    # relayout copies, bounded on-chip footprint (semaphores only) on every
    # generation.  Handles equal and unequal channel counts uniformly.
    xs2d = [x.astype(out_dtype).reshape(n, wd) for x, wd in zip(xs, widths)]

    out2d = pl.pallas_call(
        _make_cat_dma_kernel(tuple(widths)),
        out_shape=jax.ShapeDtypeStruct((n, d_total), out_dtype),
        grid=(1,),
        in_specs=[pl.BlockSpec(memory_space=pl.ANY)] * num_inputs,
        out_specs=pl.BlockSpec(memory_space=pl.ANY),
        scratch_shapes=[pltpu.SemaphoreType.DMA((num_inputs,))],
        compiler_params=pltpu.CompilerParams(has_side_effects=True),
        cost_estimate=cost,
    )(*xs2d)

    return out2d.reshape((n, sum(channels)) + trailing)


# ---------------------------------------------------------------------------
# Module-equivalent wrapper
# ---------------------------------------------------------------------------
class MergeBlock:
    def __init__(self, policy):
        if policy not in ["add", "cat"]:
            raise ValueError(
                "`merge_policy` must be one of: ['add', 'cat'], got {}".format(policy)
            )
        self.policy = policy

    def __call__(self, x):
        if self.policy == "add":
            return merge_add(x)
        elif self.policy == "cat":
            return merge_cat(x)
        else:
            raise ValueError(
                "`merge_policy` must be one of: ['add', 'cat'], got {}".format(
                    self.policy
                )
            )


if __name__ == "__main__":
    key = jax.random.PRNGKey(0)
    k1, k2, k3, k4, k5 = jax.random.split(key, 5)
    shape = (2, 4, 16, 16)  # (N, C, H, W)
    x = [
        jax.random.normal(k1, shape, dtype=jnp.float32),
        jax.random.normal(k2, shape, dtype=jnp.float32),
        jax.random.normal(k3, shape, dtype=jnp.float32),
    ]

    # 'add' policy
    out_add = jax.block_until_ready(MergeBlock("add")(x))
    ref_add = x[0] + x[1] + x[2]
    assert out_add.shape == shape and out_add.dtype == jnp.float32
    assert jnp.allclose(out_add, ref_add, atol=1e-5, rtol=1e-5)

    # 'add' with a total size not divisible by 128 (pad-and-slice path)
    ko1, ko2 = jax.random.split(k5, 2)
    odd = [
        jax.random.normal(ko1, (2, 3, 5, 7), dtype=jnp.float32),
        jax.random.normal(ko2, (2, 3, 5, 7), dtype=jnp.float32),
    ]
    out_odd = jax.block_until_ready(MergeBlock("add")(odd))
    assert out_odd.shape == (2, 3, 5, 7)
    assert jnp.allclose(out_odd, odd[0] + odd[1], atol=1e-5, rtol=1e-5)

    # 'cat' policy (equal channel counts — BiFPN case)
    out_cat = jax.block_until_ready(MergeBlock("cat")(x))
    ref_cat = jnp.concatenate(x, axis=1)
    assert out_cat.shape == (2, 12, 16, 16) and out_cat.dtype == jnp.float32
    assert jnp.allclose(out_cat, ref_cat)

    # 'cat' policy with differing channel counts (same DMA slab path)
    y = [x[0], jax.random.normal(k4, (2, 6, 16, 16), dtype=jnp.float32)]
    out_cat2 = jax.block_until_ready(MergeBlock("cat")(y))
    ref_cat2 = jnp.concatenate(y, axis=1)
    assert out_cat2.shape == (2, 10, 16, 16)
    assert jnp.allclose(out_cat2, ref_cat2)

    print("KERNEL_OK")
</pallas_src>

<mosaic_0001>
module attributes {stable_mosaic.version = 11 : i64} {
  func.func @add_kernel(%arg0: i32, %arg1: memref<2x1024xf32, #tpu.memory_space<vmem>>, %arg2: memref<2x1024xf32, #tpu.memory_space<vmem>>, %arg3: memref<2x1024xf32, #tpu.memory_space<vmem>>, %arg4: memref<2x1024xf32, #tpu.memory_space<vmem>>) attributes {dimension_semantics = [#tpu.dimension_semantics<parallel>], iteration_bounds = array<i64: 1>, scalar_prefetch = 0 : i64, scratch_operands = 0 : i64, tpu.core_type = #tpu.core_type<tc>, window_params = [{transform_indices = @transform_0, window_bounds = array<i64: 2, 1024>}, {transform_indices = @transform_1, window_bounds = array<i64: 2, 1024>}, {transform_indices = @transform_2, window_bounds = array<i64: 2, 1024>}, {transform_indices = @transform_3, window_bounds = array<i64: 2, 1024>}]} {
    %c0 = arith.constant 0 : index
    %c0_0 = arith.constant 0 : index
    %0 = vector.load %arg1[%c0, %c0_0] : memref<2x1024xf32, #tpu.memory_space<vmem>>, vector<2x1024xf32>
    %c0_1 = arith.constant 0 : index
    %c0_2 = arith.constant 0 : index
    %1 = vector.load %arg2[%c0_1, %c0_2] : memref<2x1024xf32, #tpu.memory_space<vmem>>, vector<2x1024xf32>
    %2 = arith.addf %0, %1 : vector<2x1024xf32>
    %c0_3 = arith.constant 0 : index
    %c0_4 = arith.constant 0 : index
    %3 = vector.load %arg3[%c0_3, %c0_4] : memref<2x1024xf32, #tpu.memory_space<vmem>>, vector<2x1024xf32>
    %4 = arith.addf %2, %3 : vector<2x1024xf32>
    %c0_5 = arith.constant 0 : index
    %c0_6 = arith.constant 0 : index
    %5 = vector.load %arg4[%c0_5, %c0_6] : memref<2x1024xf32, #tpu.memory_space<vmem>>, vector<2x1024xf32>
    tpu.vector_store %arg4[%c0_5, %c0_6], %4 {strides = array<i32>} : memref<2x1024xf32, #tpu.memory_space<vmem>>, vector<2x1024xf32>,
    return
  }
  func.func @transform_0(%arg0: i32) -> (i32, i32) {
    %c0_i32 = arith.constant 0 : i32
    %c0_i32_0 = arith.constant 0 : i32
    return %arg0, %c0_i32 : i32, i32
  }
  func.func @transform_1(%arg0: i32) -> (i32, i32) {
    %c0_i32 = arith.constant 0 : i32
    %c0_i32_0 = arith.constant 0 : i32
    return %arg0, %c0_i32 : i32, i32
  }
  func.func @transform_2(%arg0: i32) -> (i32, i32) {
    %c0_i32 = arith.constant 0 : i32
    %c0_i32_0 = arith.constant 0 : i32
    return %arg0, %c0_i32 : i32, i32
  }
  func.func @transform_3(%arg0: i32) -> (i32, i32) {
    %c0_i32 = arith.constant 0 : i32
    %c0_i32_0 = arith.constant 0 : i32
    return %arg0, %c0_i32 : i32, i32
  }
}

</mosaic_0001>

<bundles_post_ra>
// kernel: tpu_custom_call.1
= control target key start
LH: loop header
LB: loop body
LE: loop exit
PB: predicated region body
PF: predicated region fallthrough
CT: control target
= control target key end

     0   :  { %8 = vsyncpa [#allocation3], 0  ;;  %s228_s0 = inlined_call_operand.hbm [shape: f32[2,1024], index: 0, kind: input, shape index: {}]   ;;  %s229_s1 = inlined_call_operand.hbm [shape: f32[2,1024], index: 1, kind: input, shape index: {}]   ;;  %s230_s2 = inlined_call_operand.hbm [shape: f32[2,1024], index: 2, kind: input, shape index: {}]   ;;  %s231_s3 = inlined_call_operand.hbm [shape: f32[2,1024], index: 3, kind: output, shape index: {}]  }
   0x1   :  { %9 = vsyncpa [#allocation6], 0  ;;  %s27_s14 = sshll.u32 %s229_s1, 4  ;;  %s28_s14 = int_to_ptr.hbm [resolvable:$true] %s27_s14 }
   0x2   :  { %10 = vsyncpa [#allocation4], 0  ;;  %s192_s15 = smov [#allocation5]   ;;  %s16_s19 = sshll.u32 %s228_s0, 4  ;;  %s17_s19 = int_to_ptr.hbm [resolvable:$true] %s16_s19 }
   0x3   :  { %s29_s16 = sshll.u32 %s192_s15, 4  ;;  %s193_s20 = smov [#allocation2]   ;;  %s30_s16 = int_to_ptr.vmem [resolvable:$true] %s29_s16 }
   0x4   :  { %32 = dma.hbm_to_vmem [thread:$0]  %s28_s14, 256, %s30_s16, [#allocation6]  }
   0x5   :  { %s18_s21 = sshll.u32 %s193_s20, 4  ;;  %s38_s24 = sshll.u32 %s230_s2, 4  ;;  %s19_s21 = int_to_ptr.vmem [resolvable:$true] %s18_s21  ;;  %s39_s24 = int_to_ptr.hbm [resolvable:$true] %s38_s24 }
   0x6   :  { %21 = dma.hbm_to_vmem [thread:$0]  %s17_s19, 256, %s19_s21, [#allocation3]  }
   0x7   :  { %s194_s1 = smov [#allocation7]  }
   0x8   :  { %s40_s25 = sshll.u32 %s194_s1, 4  ;;  %s41_s25 = int_to_ptr.vmem [resolvable:$true] %s40_s25 }
   0x9   :  { %43 = dma.hbm_to_vmem [thread:$0]  %s39_s24, 256, %s41_s25, [#allocation6]  }
   0xa   :  { %186 = dma.done.wait [#allocation3], 256  }
   0xb   :  { %187 = vsyncadd [#allocation3], 4294967040 }
   0xc   :  { %188 = dma.done.wait [#allocation6], 512  }
   0xd   :  { %189 = vsyncadd [#allocation6], 4294966784  ;;  %v56_v0 = vld [vmem:[#allocation2] sm:$0xff]  ;;  %v58_v1 = vld [vmem:[#allocation5] sm:$0xff]  ;;  %s195_s0 = smov [#allocation8]   ;;  %s75_s28 = sshll.u32 %s231_s3, 4  ;;  %s76_s28 = int_to_ptr.hbm [resolvable:$true] %s75_s28 }
   0xe   :  { %v62_v2 = vld [vmem:[#allocation7] sm:$0xff]  ;;  %v60_v3 = vadd.f32 %v58_v1, %v56_v0  ;;  %v57_v4 = vld [vmem:[#allocation2 + $0x8] sm:$0xff]  ;;  %v59_v5 = vld [vmem:[#allocation5 + $0x8] sm:$0xff]  ;;  %s73_s2 = sshll.u32 %s195_s0, 4  ;;  %s74_s2 = int_to_ptr.vmem [resolvable:$true] %s73_s2 }
   0xf   :  { %v63_v6 = vld [vmem:[#allocation7 + $0x8] sm:$0xff]  ;;  %v61_v7 = vadd.f32 %v59_v5, %v57_v4 }
  0x10   :  { %v64_v8 = vadd.f32 %v62_v2, %v60_v3 }
  0x11   :  { %v65_v9 = vadd.f32 %v63_v6, %v61_v7 }
  0x12   :  { %66 = vst [vmem:[#allocation8] sm:$0xff] %v64_v8 }
  0x13   :  { %67 = vst [vmem:[#allocation8 + $0x8] sm:$0xff] %v65_v9 }
  0x14   :  { %78 = dma.vmem_to_hbm [thread:$0]  %s74_s2, 256, %s76_s28, [#allocation4]  }
  0x15   :  { %190 = dma.done.wait [#allocation4], 256  }
  0x16   :  { %191 = vsyncadd [#allocation4], 4294967040 }
  0x17   :  { %83 = vsyncpa [#allocation3], 1 }
  0x18   :  { %84 = vsyncpa [#allocation6], 1 }
  0x19   :  { %85 = vsyncpa [#allocation4], 1 }

</bundles_post_ra>
